<compile_context>
chip_gen: v7x
topology: tpu7x:2x2x1
jax: 0.10.0
libtpu: 0.0.40
codegen_flags: <defaults>
</compile_context>

<pallas_src>
import functools

import jax
import jax.numpy as jnp
from jax.experimental import pallas as pl
from jax.experimental.pallas import tpu as pltpu


def uniem_last_mean_kernel(ids_flat_ref, ids_2d_ref, ew_ref, b_ref, seg_ref,
                           out_ref, *, pad_token_id):
    """One block of TB batch rows per grid step.

    ids_flat_ref: (TB*S, 1) int32  token ids, batch rows flattened along sublanes
    ids_2d_ref:   (TB, S)   int32  same ids, lane-major layout (mask / counts)
    ew_ref:       (V, H)    bf16   fused E @ W table (VMEM-resident, 1-buffered)
    b_ref:        (1, H)    f32    synthetic-encoder bias (resident, 1-buffered)
    seg_ref:      (TB, TB*S) f32   static segment matrix (resident, 1-buffered)
    out_ref:      (TB, H)   f32    pooled (last_mean) embeddings
    """
    R = ids_flat_ref.shape[0]          # TB * S token rows in this block
    TB, H = out_ref.shape
    V = ew_ref.shape[0]

    ids = ids_flat_ref[...]                                             # (R, 1) int32

    # ---- fused gather + encoder: one_hot(ids) @ (E @ W) on the MXU ----------
    # Exact: each one-hot row selects exactly one bf16 table row (x 1.0), and
    # the MXU accumulates in f32, so x[r, :] == float32(EW_bf16[ids[r], :]).
    vocab_iota = jax.lax.broadcasted_iota(jnp.int32, (R, V), 1)
    one_hot = jnp.where(vocab_iota == ids, 1.0, 0.0).astype(ew_ref.dtype)
    x = jnp.dot(one_hot, ew_ref[...],
                preferred_element_type=jnp.float32)                     # (R, H) f32
    h = jnp.tanh(x + b_ref[...])                                        # (R, H) f32, EUP

    # ---- last_mean pooling ---------------------------------------------------
    # Denominator: per-row token count as an XLU lane reduce (no MXU pass).
    valid2d = jnp.where(ids_2d_ref[...] != pad_token_id, 1.0, 0.0)      # (TB, S) f32
    den = jnp.maximum(jnp.sum(valid2d, axis=1, keepdims=True), 1.0)     # (TB, 1)

    # Numerator: fold the mask into the (tiny) segment matrix, then one
    # (TB, R) x (R, H) MXU segment-sum matmul — no (R, H) broadcast multiply.
    seg_masked = seg_ref[...] * jnp.tile(valid2d, (1, TB))              # (TB, R)
    num = jnp.dot(seg_masked, h, preferred_element_type=jnp.float32)    # (TB, H)

    out_ref[...] = num * pl.reciprocal(den, approx=False)


def _round_up(x, m):
    return -(-x // m) * m


def _padded_block_bytes(shape, itemsize):
    """VMEM footprint of one buffer of a block, with (8,128) tile padding."""
    dims = list(shape)
    if len(dims) == 1:
        dims = [1] + dims
    dims[-1] = _round_up(dims[-1], 128)
    dims[-2] = _round_up(dims[-2], 8)
    n = 1
    for d in dims:
        n *= d
    return n * itemsize


def _default_batch_tile(B, S):
    """Pick TB so R = TB*S >= 256 (MXU M) and grid = B // TB >= 4 (v7x TCs)."""
    candidates = [t for t in range(8, B + 1, 8) if B % t == 0]
    if not candidates:
        return B
    for t in candidates:
        if t * S >= 256 and B // t >= 4:
            return t
    for t in candidates:
        if t * S >= 256:
            return t
    return candidates[-1]


def uniem_embedder_forward(input_ids, emb_table, w, b, pad_token_id=0, tb=None):
    """JAX wrapper reproducing UniemEmbedder (last_mean) forward semantics."""
    B, S = input_ids.shape
    V, H = emb_table.shape
    if tb is None:
        tb = _default_batch_tile(B, S)
    assert B % tb == 0, "batch must be divisible by the batch tile"
    assert H % 128 == 0, "hidden must be lane-aligned (pad H upstream)"
    assert (tb * S) % 8 == 0, "TB*S must be sublane-aligned (pad S upstream)"
    assert tb % 8 == 0 or tb == B, "batch tile must be sublane-aligned"
    assert V % 8 == 0, "vocab must be sublane-aligned for the (V,H) operand"

    R = tb * S

    # --- parameter prep (one-time, outside the kernel) -----------------------
    # Fuse the synthetic encoder's dense weight into the embedding table:
    # one_hot @ E @ W == (E @ W)[ids].  Valid only for this 1-layer stand-in.
    ew_bf16 = jnp.dot(emb_table.astype(jnp.float32), w.astype(jnp.float32)
                      ).astype(jnp.bfloat16)                             # (V, H)
    b2 = b.reshape(1, H).astype(jnp.float32)

    # ids in both layouts (both tiny int32 streams):
    #   flat (R,1)   -> one-hot gather operand (sublane-major)
    #   2-D  (TB,S)  -> validity mask / token counts (lane-major)
    ids_flat = input_ids.reshape(B * S, 1).astype(jnp.int32)
    ids_2d = input_ids.astype(jnp.int32)

    # Static (TB, R) segment matrix: seg[t, q*S + s] = (q == t).
    seg = (jnp.arange(tb)[:, None] == (jnp.arange(R)[None, :] // S)
           ).astype(jnp.float32)

    # --- VMEM budget derived from the actual (padded) buffer sizes -----------
    operand_bytes = (
        2 * _padded_block_bytes((R, 1), 4)        # ids_flat, double-buffered
        + 2 * _padded_block_bytes((tb, S), 4)     # ids_2d,   double-buffered
        + 1 * _padded_block_bytes((V, H), 2)      # fused EW table, 1-buffered
        + 1 * _padded_block_bytes((1, H), 4)      # bias,           1-buffered
        + 1 * _padded_block_bytes((tb, R), 4)     # segment matrix, 1-buffered
        + 2 * _padded_block_bytes((tb, H), 4)     # output block, double-buffered
    )
    intermediate_bytes = (
        _padded_block_bytes((R, V), 2)            # one_hot
        + 2 * _padded_block_bytes((R, H), 4)      # x, h
        + 2 * _padded_block_bytes((tb, R), 4)     # seg_masked / tiled mask
    )
    vmem_limit = max(16 << 20, 2 * (operand_bytes + intermediate_bytes))

    kernel = functools.partial(uniem_last_mean_kernel, pad_token_id=pad_token_id)

    return pl.pallas_call(
        kernel,
        out_shape=jax.ShapeDtypeStruct((B, H), jnp.float32),
        grid_spec=pltpu.PrefetchScalarGridSpec(
            num_scalar_prefetch=0,
            grid=(B // tb,),
            in_specs=[
                # per-step streams (tiny int32 DMAs), default double-buffered
                pl.BlockSpec((R, 1), lambda i: (i, 0)),
                pl.BlockSpec((tb, S), lambda i: (i, 0)),
                # constant-index residents: single-buffered (halved footprint)
                pl.BlockSpec((V, H), lambda i: (0, 0),
                             pipeline_mode=pl.Buffered(1)),
                pl.BlockSpec((1, H), lambda i: (0, 0),
                             pipeline_mode=pl.Buffered(1)),
                pl.BlockSpec((tb, R), lambda i: (0, 0),
                             pipeline_mode=pl.Buffered(1)),
            ],
            out_specs=pl.BlockSpec((tb, H), lambda i: (i, 0)),  # lane-dense 2-D
        ),
        compiler_params=pltpu.CompilerParams(
            dimension_semantics=("parallel",),   # megacore sharding on v7x
            vmem_limit_bytes=int(vmem_limit),
        ),
    )(ids_flat, ids_2d, ew_bf16, b2, seg)


def _reference_forward(input_ids, emb_table, w, b, pad_token_id=0):
    # Pure-JAX reference with the same fused bf16 EW quantization as the kernel.
    ew = jnp.dot(emb_table.astype(jnp.float32), w.astype(jnp.float32)
                 ).astype(jnp.bfloat16).astype(jnp.float32)
    mask = (input_ids != pad_token_id).astype(jnp.float32)
    h = jnp.tanh(ew[input_ids] + b[None, None, :].astype(jnp.float32))
    num = jnp.sum(h * mask[:, :, None], axis=1)
    den = jnp.maximum(jnp.sum(mask, axis=1, keepdims=True), 1.0)
    return num / den


if __name__ == "__main__":
    # Shapes chosen so R = TB*S = 256 (fills MXU M on v6e/v7x) and grid = 4
    # (2 steps per v7x TensorCore); still small enough to run instantly.
    B, S, H, V = 64, 16, 128, 64
    pad_token_id = 0

    key = jax.random.PRNGKey(0)
    k_ids, k_emb, k_w, k_b = jax.random.split(key, 4)

    emb_table = 0.02 * jax.random.normal(k_emb, (V, H), dtype=jnp.float32)
    w = 0.1 * jax.random.normal(k_w, (H, H), dtype=jnp.float32)
    b = 0.01 * jax.random.normal(k_b, (H,), dtype=jnp.float32)

    # Token ids in [1, V); pad the tail of a few rows to exercise the mask.
    input_ids = jax.random.randint(k_ids, (B, S), 1, V, dtype=jnp.int32)
    input_ids = input_ids.at[0, -3:].set(pad_token_id)
    input_ids = input_ids.at[5, -9:].set(pad_token_id)
    input_ids = input_ids.at[17, -1:].set(pad_token_id)
    input_ids = input_ids.at[42, -6:].set(pad_token_id)

    out = uniem_embedder_forward(input_ids, emb_table, w, b, pad_token_id)
    out = jax.block_until_ready(out)

    ref = _reference_forward(input_ids, emb_table, w, b, pad_token_id)
    assert out.shape == (B, H)
    # Tolerance covers MXU f32-pass precision / accumulation-order differences
    # of the pooling matmul and the EUP-vs-XLA tanh; the bf16 EW quantization
    # is applied to both sides.  Any structural bug errs at >= 1e-2.
    assert jnp.allclose(out, ref, atol=2e-4, rtol=2e-3), "mismatch vs reference"

    print("KERNEL_OK")
</pallas_src>

<mosaic_0001>
module attributes {stable_mosaic.version = 11 : i64} {
  func.func @uniem_last_mean_kernel(%arg0: i32, %arg1: memref<256x1xi32, #tpu.memory_space<vmem>>, %arg2: memref<16x16xi32, #tpu.memory_space<vmem>>, %arg3: memref<64x128xbf16, #tpu.memory_space<vmem>>, %arg4: memref<1x128xf32, #tpu.memory_space<vmem>>, %arg5: memref<16x256xf32, #tpu.memory_space<vmem>>, %arg6: memref<16x128xf32, #tpu.memory_space<vmem>>) attributes {dimension_semantics = [#tpu.dimension_semantics<parallel>], iteration_bounds = array<i64: 4>, scalar_prefetch = 0 : i64, scratch_operands = 0 : i64, tpu.core_type = #tpu.core_type<tc>, window_params = [{transform_indices = @transform_0, window_bounds = array<i64: 256, 1>}, {transform_indices = @transform_1, window_bounds = array<i64: 16, 16>}, {pipeline_mode = #tpu.pipeline_mode<synchronous>, transform_indices = @transform_2, window_bounds = array<i64: 64, 128>}, {pipeline_mode = #tpu.pipeline_mode<synchronous>, transform_indices = @transform_3, window_bounds = array<i64: 1, 128>}, {pipeline_mode = #tpu.pipeline_mode<synchronous>, transform_indices = @transform_4, window_bounds = array<i64: 16, 256>}, {transform_indices = @transform_5, window_bounds = array<i64: 16, 128>}]} {
    %c0 = arith.constant 0 : index
    %c0_0 = arith.constant 0 : index
    %0 = vector.load %arg1[%c0, %c0_0] : memref<256x1xi32, #tpu.memory_space<vmem>>, vector<256x1xi32>
    %1 = tpu.iota {dimensions = array<i32: 1>} : vector<256x64xi32>
    %2 = vector.broadcast %0 : vector<256x1xi32> to vector<256x64xi32>
    %3 = arith.cmpi eq, %1, %2 : vector<256x64xi32>
    %cst = arith.constant 1.000000e+00 : f32
    %cst_1 = arith.constant 0.000000e+00 : f32
    %4 = vector.broadcast %cst : f32 to vector<256x64xf32>
    %5 = vector.broadcast %cst_1 : f32 to vector<256x64xf32>
    %6 = arith.select %3, %4, %5 : vector<256x64xi1>, vector<256x64xf32>
    %7 = arith.truncf %6 : vector<256x64xf32> to vector<256x64xbf16>
    %c0_2 = arith.constant 0 : index
    %c0_3 = arith.constant 0 : index
    %8 = vector.load %arg3[%c0_2, %c0_3] : memref<64x128xbf16, #tpu.memory_space<vmem>>, vector<64x128xbf16>
    %cst_4 = arith.constant dense<0.000000e+00> : vector<256x128xf32>
    %9 = tpu.matmul %7, %8, %cst_4 {dimension_numbers = #tpu.dot_dimension_numbers<[1], [0], [0], [1], [0, 0, 1, 1], [], []>} : vector<256x64xbf16>, vector<64x128xbf16>, vector<256x128xf32> -> vector<256x128xf32>
    %c0_5 = arith.constant 0 : index
    %c0_6 = arith.constant 0 : index
    %10 = vector.load %arg4[%c0_5, %c0_6] : memref<1x128xf32, #tpu.memory_space<vmem>>, vector<1x128xf32>
    %11 = vector.broadcast %10 : vector<1x128xf32> to vector<256x128xf32>
    %12 = arith.addf %9, %11 : vector<256x128xf32>
    %13 = math.tanh %12 : vector<256x128xf32>
    %c0_7 = arith.constant 0 : index
    %c0_8 = arith.constant 0 : index
    %14 = vector.load %arg2[%c0_7, %c0_8] : memref<16x16xi32, #tpu.memory_space<vmem>>, vector<16x16xi32>
    %c0_i32 = arith.constant 0 : i32
    %15 = vector.broadcast %c0_i32 : i32 to vector<16x16xi32>
    %16 = arith.cmpi ne, %14, %15 : vector<16x16xi32>
    %cst_9 = arith.constant 1.000000e+00 : f32
    %cst_10 = arith.constant 0.000000e+00 : f32
    %17 = vector.broadcast %cst_9 : f32 to vector<16x16xf32>
    %18 = vector.broadcast %cst_10 : f32 to vector<16x16xf32>
    %19 = arith.select %16, %17, %18 : vector<16x16xi1>, vector<16x16xf32>
    %cst_11 = arith.constant dense<0.000000e+00> : vector<16xf32>
    %20 = vector.multi_reduction <add>, %19, %cst_11 [1] : vector<16x16xf32> to vector<16xf32>
    %21 = vector.shape_cast %20 : vector<16xf32> to vector<16x1xf32>
    %cst_12 = arith.constant 1.000000e+00 : f32
    %22 = vector.broadcast %cst_12 : f32 to vector<16x1xf32>
    %23 = arith.maximumf %21, %22 : vector<16x1xf32>
    %c0_13 = arith.constant 0 : index
    %c0_14 = arith.constant 0 : index
    %24 = vector.load %arg5[%c0_13, %c0_14] : memref<16x256xf32, #tpu.memory_space<vmem>>, vector<16x256xf32>
    %25 = tpu.concatenate %19, %19, %19, %19, %19, %19, %19, %19, %19, %19, %19, %19, %19, %19, %19, %19 in 1 : vector<16x16xf32>, vector<16x16xf32>, vector<16x16xf32>, vector<16x16xf32>, vector<16x16xf32>, vector<16x16xf32>, vector<16x16xf32>, vector<16x16xf32>, vector<16x16xf32>, vector<16x16xf32>, vector<16x16xf32>, vector<16x16xf32>, vector<16x16xf32>, vector<16x16xf32>, vector<16x16xf32>, vector<16x16xf32> -> vector<16x256xf32>
    %26 = arith.mulf %24, %25 : vector<16x256xf32>
    %cst_15 = arith.constant dense<0.000000e+00> : vector<16x128xf32>
    %27 = tpu.matmul %26, %13, %cst_15 {dimension_numbers = #tpu.dot_dimension_numbers<[1], [0], [0], [1], [0, 0, 1, 1], [], []>} : vector<16x256xf32>, vector<256x128xf32>, vector<16x128xf32> -> vector<16x128xf32>
    %28 = tpu.reciprocal %23 : vector<16x1xf32> -> vector<16x1xf32>
    %29 = vector.broadcast %28 : vector<16x1xf32> to vector<16x128xf32>
    %30 = arith.mulf %27, %29 : vector<16x128xf32>
    %c0_16 = arith.constant 0 : index
    %c0_17 = arith.constant 0 : index
    %31 = vector.load %arg6[%c0_16, %c0_17] : memref<16x128xf32, #tpu.memory_space<vmem>>, vector<16x128xf32>
    tpu.vector_store %arg6[%c0_16, %c0_17], %30 {strides = array<i32>} : memref<16x128xf32, #tpu.memory_space<vmem>>, vector<16x128xf32>,
    return
  }
  func.func @transform_0(%arg0: i32) -> (i32, i32) {
    %c0_i32 = arith.constant 0 : i32
    %c0_i32_0 = arith.constant 0 : i32
    return %arg0, %c0_i32 : i32, i32
  }
  func.func @transform_1(%arg0: i32) -> (i32, i32) {
    %c0_i32 = arith.constant 0 : i32
    %c0_i32_0 = arith.constant 0 : i32
    return %arg0, %c0_i32 : i32, i32
  }
  func.func @transform_2(%arg0: i32) -> (i32, i32) {
    %c0_i32 = arith.constant 0 : i32
    %c0_i32_0 = arith.constant 0 : i32
    %c0_i32_1 = arith.constant 0 : i32
    return %c0_i32, %c0_i32_0 : i32, i32
  }
  func.func @transform_3(%arg0: i32) -> (i32, i32) {
    %c0_i32 = arith.constant 0 : i32
    %c0_i32_0 = arith.constant 0 : i32
    %c0_i32_1 = arith.constant 0 : i32
    return %c0_i32, %c0_i32_0 : i32, i32
  }
  func.func @transform_4(%arg0: i32) -> (i32, i32) {
    %c0_i32 = arith.constant 0 : i32
    %c0_i32_0 = arith.constant 0 : i32
    %c0_i32_1 = arith.constant 0 : i32
    return %c0_i32, %c0_i32_0 : i32, i32
  }
  func.func @transform_5(%arg0: i32) -> (i32, i32) {
    %c0_i32 = arith.constant 0 : i32
    %c0_i32_0 = arith.constant 0 : i32
    return %arg0, %c0_i32 : i32, i32
  }
}

</mosaic_0001>

<bundles_post_ra>
// kernel: tpu_custom_call.1
= control target key start
LH: loop header
LB: loop body
LE: loop exit
PB: predicated region body
PF: predicated region fallthrough
CT: control target
= control target key end

     0   :  { %10 = vsyncpa [#allocation3], 0  ;;  %s1798_s0 = inlined_call_operand.vmem [shape: s32[1024,1], index: 0, kind: input, shape index: {}]   ;;  %s1799_s1 = inlined_call_operand.vmem [shape: s32[64,16], index: 1, kind: input, shape index: {}]   ;;  %s1800_s2 = inlined_call_operand.vmem [shape: bf16[64,128], index: 2, kind: input, shape index: {}]   ;;  %s1801_s3 = inlined_call_operand.vmem [shape: f32[1,128], index: 3, kind: input, shape index: {}]   ;;  %s1802_s4 = inlined_call_operand.vmem [shape: f32[16,256], index: 4, kind: input, shape index: {}]   ;;  %s1803_s5 = inlined_call_operand.hbm [shape: f32[64,128], index: 5, kind: output, shape index: {}]  }
   0x1   :  { %12 = vsyncpa [#allocation3 + $0x1], 0  ;;  %s1411_s18 = smov 0   ;;  %s1413_s19 = smov 0  }
   0x2   :  { %s1415_s20 = smov 0   ;;  %s1417_s21 = smov 0  }
   0x3 LB: > { %s1432_s22 = sadd.s32 4294967295, %s1367_s21   ;;  %s995_s23 = sadd.s32 4294967294, %s1367_s21   ;;  %s1367_s21 = sphi %s1417_s21, %s1809_s21   ;;  %s1363_s20 = sphi %s1415_s20, %s1808_s20   ;;  %s1359_s19 = sphi %s1413_s19, %s1807_s19   ;;  %s1355_s18 = sphi %s1411_s18, %s1806_s18  }
   0x4   : > { %s1436_s24 = sadd.s32 1, %s1367_s21   ;;  %s140_s25 = sadd.s32 1, %s1363_s20 }
   0x5   : > { %s137_s26 = ssub.s32 %s1367_s21, %s1436_s24  ;;  %p150_p0 = scmp.ne.s32.totalorder %s1363_s20, %s1359_s19 }
   0x6   : > { %p138_p1 = scmp.eq.s32.totalorder %s137_s26, 0  ;;  %p151_p2 = scmp.eq.s32.totalorder %s1432_s22, 3 }
   0x7   : > { %p156_p3 = scmp.ne.s32.totalorder %s1359_s19, %s1355_s18  ;;  %p157_p4 = scmp.eq.s32.totalorder %s995_s23, 3 }
   0x8   : > { %s1447_s27 = scalar_select %p138_p1, %s1363_s20, %s140_s25  }
   0x9   : > { %p1449_p5 = por %p151_p2, %p150_p0  ;;  %p1453_p6 = por %p157_p4, %p156_p3 }
   0xa   : > { %p998_p7 = scmp.ge.s32.totalorder %s1367_s21, 1  ;;  %p202_p8 = scmp.lt.s32.totalorder %s1367_s21, 5 }
   0xc   : > { %p203_p9 = pnand %p998_p7, %p202_p8 }
   0xd   : > { %s1000_s30 = sshll.u32 (!%p203_p9), %s1432_s22, 5  ;;  %v1369_v0 = vmov (!%p203_p9), 0   ;;  %v1233_v1 = vld [vmem:[%s1800_s2] sm:$0xff] (!%p203_p9)   ;;  %v1234_v2 = vld [vmem:[%s1800_s2 + $0x8] sm:$0xff] (!%p203_p9)   ;;  %v1235_v11 = vld [vmem:[%s1800_s2 + $0x10] sm:$0xff] (!%p203_p9)   ;;  %s1002_s23 = sshll.u32 (!%p203_p9), %s1432_s22, 1  ;;  %v281_v43 = vlaneseq (!%p203_p9) }
   0xe   : > { %206 = sbr.rel (%p203_p9) target bundleno = 692 (0x2b4), region = 40  ;;  %1212 = vset.pattern.permute.xlu1 (!%p203_p9), %v1369_v0  ;;  %1211 = vset.pattern.permute.xlu0 (!%p203_p9), %v1369_v0  ;;  %p236_p10 = scmp.lt.s32.totalorder (!%p203_p9), %s1000_s30, 127  ;;  %v1236_v12 = vld [vmem:[%s1800_s2 + $0x18] sm:$0xff] (!%p203_p9)   ;;  %v1370_v39 = vmov (!%p203_p9), 0.0   ;;  %vm498_vm6 = vcmask (!%p203_p9), 523264  }
   0xf   : > { %1089 = vmatprep.subr.bf16.mxu0 (!%p203_p9), %v1233_v1  ;;  %p242_p11 = scmp.lt.s32.totalorder (!%p203_p9), %s1002_s23, 7  ;;  %s1371_s7 = smov (!%p203_p9), 16   ;;  %v1527_v44 = vand.u32 (!%p203_p9), 127, %v281_v43 }
  0x10   : > { %1090 = vmatpush3.bf16.msra.mxu0 (!%p203_p9), %v1233_v1  ;;  %s1372_s8 = smov (!%p203_p9), 32   ;;  %s1373_s9 = smov (!%p203_p9), 48  }
  0x11   : > { %1091 = vmatprep.subr.bf16.mxu0 (!%p203_p9), %v1234_v2  ;;  %s1375_s11 = smov (!%p203_p9), 80   ;;  %s1376_s12 = smov (!%p203_p9), 96  }
  0x14   : > { %1092 = vmatpush3.bf16.msra.mxu0 (!%p203_p9), %v1234_v2 }
  0x15   : > { %s1811_s30 = smov (!%p236_p10, %s1000_s30), 127  ;;  %1093 = vmatprep.subr.bf16.mxu0 %v1235_v11  ;;  %s1813_s23 = smov (!%p242_p11, %s1002_s23), 7 }
  0x16   : > { %s1001_s10 = sshll.u32 %s1811_s30, 3  ;;  %s1003_s25 = sshll.u32 %s1813_s23, 3 }
  0x17   : > { %s1469_s13 = scalar_lea.vmem %s1798_s0, %s1001_s10  ;;  %s245_s6 = scalar_lea.vmem %s1799_s1, %s1003_s25 }
  0x18   : > { %v251_v3 = vld [vmem:[%s1469_s13 + $0x10] sm:$0xff]  ;;  %v249_v4 = vld [vmem:[%s1469_s13] sm:$0xff]  ;;  %v252_v5 = vld [vmem:[%s1469_s13 + $0x18] sm:$0xff]  ;;  %1094 = vmatpush3.bf16.msra.mxu0 %v1235_v11  ;;  %s1374_s10 = smov 64  }
  0x19   : > { %290 = vperm.xlu1 %1212, %v251_v3   ;;  %284 = vperm.xlu0 %1211, %v249_v4   ;;  %v250_v6 = vld [vmem:[%s1469_s13 + $0x8] sm:$0xff]  ;;  %v253_v8 = vld [vmem:[%s1469_s13 + $0x20] sm:$0xff]  ;;  %v256_v9 = vld [vmem:[%s1469_s13 + $0x38] sm:$0xff] }
  0x1a   : > { %v254_v7 = vld [vmem:[%s1469_s13 + $0x28] sm:$0xff]  ;;  %v255_v10 = vld [vmem:[%s1469_s13 + $0x30] sm:$0xff]  ;;  %v257_v14 = vld [vmem:[%s1469_s13 + $0x40] sm:$0xff]  ;;  %1095 = vmatprep.subr.bf16.mxu0 %v1236_v12 }
  0x1b   : > { %v258_v13 = vld [vmem:[%s1469_s13 + $0x48] sm:$0xff]  ;;  %v260_v15 = vld [vmem:[%s1469_s13 + $0x58] sm:$0xff]  ;;  %v259_v16 = vld [vmem:[%s1469_s13 + $0x50] sm:$0xff] }
  0x1c   : > { %1096 = vmatpush3.bf16.msra.mxu0 %v1236_v12  ;;  %v262_v17 = vld [vmem:[%s1469_s13 + $0x68] sm:$0xff]  ;;  %v261_v18 = vld [vmem:[%s1469_s13 + $0x60] sm:$0xff]  ;;  %v264_v19 = vld [vmem:[%s1469_s13 + $0x78] sm:$0xff] }
  0x1d   : > { %293 = vperm.xlu1 %1212, %v252_v5   ;;  %287 = vperm.xlu0 %1211, %v250_v6   ;;  %v263_v20 = vld [vmem:[%s1469_s13 + $0x70] sm:$0xff]  ;;  %v266_v21 = vld [vmem:[%s1469_s13 + $0x88] sm:$0xff]  ;;  %v265_v22 = vld [vmem:[%s1469_s13 + $0x80] sm:$0xff] }
  0x1e   : > { %v268_v23 = vld [vmem:[%s1469_s13 + $0x98] sm:$0xff]  ;;  %v267_v24 = vld [vmem:[%s1469_s13 + $0x90] sm:$0xff]  ;;  %v270_v25 = vld [vmem:[%s1469_s13 + $0xa8] sm:$0xff] }
  0x1f   : > { %v269_v26 = vld [vmem:[%s1469_s13 + $0xa0] sm:$0xff]  ;;  %v272_v27 = vld [vmem:[%s1469_s13 + $0xb8] sm:$0xff]  ;;  %v271_v28 = vld [vmem:[%s1469_s13 + $0xb0] sm:$0xff] }
  0x20   : > { %v274_v29 = vld [vmem:[%s1469_s13 + $0xc8] sm:$0xff]  ;;  %v273_v30 = vld [vmem:[%s1469_s13 + $0xc0] sm:$0xff]  ;;  %v276_v31 = vld [vmem:[%s1469_s13 + $0xd8] sm:$0xff] }
  0x21   : > { %299 = vperm.xlu1 %1212, %v254_v7   ;;  %296 = vperm.xlu0 %1211, %v253_v8   ;;  %v275_v32 = vld [vmem:[%s1469_s13 + $0xd0] sm:$0xff]  ;;  %v278_v33 = vld [vmem:[%s1469_s13 + $0xe8] sm:$0xff]  ;;  %v277_v34 = vld [vmem:[%s1469_s13 + $0xe0] sm:$0xff] }
  0x22   : > { %v280_v35 = vld [vmem:[%s1469_s13 + $0xf8] sm:$0xff]  ;;  %v279_v36 = vld [vmem:[%s1469_s13 + $0xf0] sm:$0xff]  ;;  %v740_v37 = vld [vmem:[%s245_s6] sm:$0xff]  ;;  %s1377_s13 = smov 112  }
  0x23   : > { %v741_v38 = vld [vmem:[%s245_s6 + $0x8] sm:$0xff]  ;;  %vm742_vm0 = vcmp.ne.s32.totalorder %v740_v37, 0 }
  0x24   : > { %vm743_vm1 = vcmp.ne.s32.totalorder %v741_v38, 0  ;;  %v1514_v40 = vsel %vm742_vm0, 1.0, %v1370_v39 }
  0x25   : > { %305 = vperm.xlu1 %1212, %v256_v9   ;;  %302 = vperm.xlu0 %1211, %v255_v10   ;;  %v1517_v41 = vsel %vm743_vm1, 1.0, %v1370_v39 }
  0x26   : > { %v1213_v42 = vpack.i.bf16 %v1517_v41, %v1514_v40 }
  0x29   : > { %311 = vperm.xlu1 %1212, %v258_v13   ;;  %308 = vperm.xlu0 %1211, %v257_v14  }
  0x2d   : > { %317 = vperm.xlu1 %1212, %v260_v15   ;;  %314 = vperm.xlu0 %1211, %v259_v16  }
  0x31   : > { %323 = vperm.xlu1 %1212, %v262_v17   ;;  %320 = vperm.xlu0 %1211, %v261_v18  }
  0x35   : > { %329 = vperm.xlu1 %1212, %v264_v19   ;;  %326 = vperm.xlu0 %1211, %v263_v20  }
  0x39   : > { %335 = vperm.xlu1 %1212, %v266_v21   ;;  %332 = vperm.xlu0 %1211, %v265_v22  }
  0x3d   : > { %341 = vperm.xlu1 %1212, %v268_v23   ;;  %338 = vperm.xlu0 %1211, %v267_v24  }
  0x41   : > { %347 = vperm.xlu1 %1212, %v270_v25   ;;  %344 = vperm.xlu0 %1211, %v269_v26  }
  0x45   : > { %353 = vperm.xlu1 %1212, %v272_v27   ;;  %350 = vperm.xlu0 %1211, %v271_v28  }
  0x49   : > { %359 = vperm.xlu1 %1212, %v274_v29   ;;  %356 = vperm.xlu0 %1211, %v273_v30  }
  0x4d   : > { %365 = vperm.xlu1 %1212, %v276_v31   ;;  %362 = vperm.xlu0 %1211, %v275_v32  }
  0x51   : > { %371 = vperm.xlu1 %1212, %v278_v33   ;;  %368 = vperm.xlu0 %1211, %v277_v34  }
  0x55   : > { %377 = vperm.xlu1 %1212, %v280_v35   ;;  %374 = vperm.xlu0 %1211, %v279_v36  }
  0x59   : > { %1214 = vrot.lane.b32.xlu0 %v1213_v42, %s1371_s7  ;;  %1219 = vrot.lane.b32.xlu1 %v1213_v42, %s1372_s8  ;;  %s232_s8 = sand.u32 1, %s1359_s19  }
  0x5a   : > { %s1757_s16 = scalar_lea.sflag [#allocation3], %s232_s8 }
  0x5d   : > { %1224 = vrot.lane.b32.xlu0 %v1213_v42, %s1373_s9  ;;  %1229 = vrot.lane.b32.xlu1 %v1213_v42, %s1374_s10  ;;  %s999_s9 = sshll.u32 %s232_s8, 4 }
  0x5e   : > { %s234_s10 = scalar_lea.vmem [#allocation2], %s999_s9 }
  0x61   : > { %785 = vrot.lane.b32.xlu0 %v1514_v40, %s1375_s11  ;;  %791 = vrot.lane.b32.xlu1 %v1514_v40, %s1376_s12 }
  0x65   : > { %797 = vrot.lane.b32.xlu0 %v1514_v40, %s1377_s13  ;;  %787 = vrot.lane.b32.xlu1 %v1517_v41, %s1375_s11  ;;  %s921_s11 = sshll.u32 %s234_s10, 4  ;;  %s1750_s11 = int_to_ptr.vmem [resolvable:$true] %s921_s11 }
  0x66   : > { %s1305_s17 = scalar_lea.vmem %s1750_s11, 256 }
  0x67   : > { %p1306_p12 = scmp.ne.s32.totalorder %s1750_s11, %s1305_s17 }
  0x69   : > { %793 = vrot.lane.b32.xlu0 %v1517_v41, %s1376_s12  ;;  %799 = vrot.lane.b32.xlu1 %v1517_v41, %s1377_s13  ;;  %s1030_s12 = sshll.u32 %s1432_s22, 8  ;;  %p1307_p13 = pnand %p1306_p12, %p1449_p5 }
  0x6a   : > { %s1755_s15 = scalar_lea.hbm %s1803_s5, %s1030_s12  ;;  %s1378_s22 = smov [#allocation2]  }
  0x6b   : > { %p1308_p0 = pneg %p1307_p13  ;;  %s1309_s23 = sshll.u32 %s1378_s22, 4  ;;  %s1310_s23 = int_to_ptr.vmem [resolvable:$false] %s1309_s23 }
  0x6c   : > { %s1311_s25 = scalar_lea.vmem %s1310_s23, 512  ;;  %p1312_p1 = scmp.lt.s32.totalorder %s1750_s11, %s1310_s23 }
  0x6d   : > { %p1313_p2 = scmp.lt.s32.totalorder %s1311_s25, %s1305_s17 }
  0x6f   : > { %p1314_p3 = por %p1313_p2, %p1312_p1 }
  0x71   : > { %p1315_p4 = pnand %p1314_p3, %p1308_p0 }
  0x98   : > { %v291_v45 = vpop.permute.xlu1 %290  ;;  %v285_v46 = vpop.permute.xlu0 %284 }
  0x99   : > { %vm381_vm2 = vcmp.eq.s32.totalorder %v1527_v44, %v291_v45  ;;  %vm379_vm3 = vcmp.eq.s32.totalorder %v1527_v44, %v285_v46 }
  0x9a   : > { %v413_v49 = vsel %vm381_vm2, 1.0, %v1370_v39  ;;  %v411_v50 = vsel %vm379_vm3, 1.0, %v1370_v39 }
  0x9c   : > { %v294_v47 = vpop.permute.xlu1 %293  ;;  %v288_v48 = vpop.permute.xlu0 %287 }
  0x9d   : > { %vm382_vm4 = vcmp.eq.s32.totalorder %v1527_v44, %v294_v47  ;;  %vm380_vm5 = vcmp.eq.s32.totalorder %v1527_v44, %v288_v48 }
  0x9e   : > { %v414_v51 = vsel %vm382_vm4, 1.0, %v1370_v39  ;;  %v412_v52 = vsel %vm380_vm5, 1.0, %v1370_v39 }
  0x9f   : > { %v444_v53 = vpack.c.bf16 %v414_v51, %v413_v49  ;;  %v443_v54 = vpack.c.bf16 %v412_v52, %v411_v50 }
  0xa0   : > { %v300_v55 = vpop.permute.xlu1 %299  ;;  %v297_v56 = vpop.permute.xlu0 %296 }
  0xa1   : > { %vm384_vm7 = vcmp.eq.s32.totalorder %v1527_v44, %v300_v55  ;;  %vm383_vm8 = vcmp.eq.s32.totalorder %v1527_v44, %v297_v56  ;;  %1097 = vmatprep.mubr.msk.bf16.mxu0 %vm498_vm6, %v443_v54 }
  0xa2   : > { %v416_v57 = vsel %vm384_vm7, 1.0, %v1370_v39  ;;  %v415_v58 = vsel %vm383_vm8, 1.0, %v1370_v39  ;;  %1098 = vmatmul.mubr.msk.bf16.vlgmr.msra.gmra.mrb[0].mxu0 %vm498_vm6, %v444_v53 }
  0xa3   : > { %v445_v59 = vpack.c.bf16 %v416_v57, %v415_v58 }
  0xa4   : > { %v306_v60 = vpop.permute.xlu1 %305  ;;  %v303_v61 = vpop.permute.xlu0 %302 }
  0xa5   : > { %vm386_vm9 = vcmp.eq.s32.totalorder %v1527_v44, %v306_v60  ;;  %vm385_vm10 = vcmp.eq.s32.totalorder %v1527_v44, %v303_v61  ;;  %1101 = vmatprep.mubr.msk.bf16.mxu0 %vm498_vm6, %v445_v59 }
  0xa6   : > { %v418_v62 = vsel %vm386_vm9, 1.0, %v1370_v39  ;;  %v417_v63 = vsel %vm385_vm10, 1.0, %v1370_v39 }
  0xa7   : > { %v446_v0 = vpack.c.bf16 %v418_v62, %v417_v63 }
  0xa8   : > { %v312_v1 = vpop.permute.xlu1 %311  ;;  %v309_v2 = vpop.permute.xlu0 %308 }
  0xa9   : > { %vm388_vm11 = vcmp.eq.s32.totalorder %v1527_v44, %v312_v1  ;;  %vm387_vm12 = vcmp.eq.s32.totalorder %v1527_v44, %v309_v2 }
  0xaa   : > { %v420_v3 = vsel %vm388_vm11, 1.0, %v1370_v39  ;;  %v419_v4 = vsel %vm387_vm12, 1.0, %v1370_v39  ;;  %1102 = vmatmul.mubr.msk.bf16.gmra.mrb[4].mxu0 %vm498_vm6, %v446_v0 }
  0xab   : > { %v447_v5 = vpack.c.bf16 %v420_v3, %v419_v4 }
  0xac   : > { %v318_v6 = vpop.permute.xlu1 %317  ;;  %v315_v7 = vpop.permute.xlu0 %314 }
  0xad   : > { %vm390_vm13 = vcmp.eq.s32.totalorder %v1527_v44, %v318_v6  ;;  %vm389_vm14 = vcmp.eq.s32.totalorder %v1527_v44, %v315_v7  ;;  %1105 = vmatprep.mubr.msk.bf16.mxu0 %vm498_vm6, %v447_v5 }
  0xae   : > { %v422_v8 = vsel %vm390_vm13, 1.0, %v1370_v39  ;;  %v421_v9 = vsel %vm389_vm14, 1.0, %v1370_v39 }
  0xaf   : > { %v448_v10 = vpack.c.bf16 %v422_v8, %v421_v9 }
  0xb0   : > { %v324_v11 = vpop.permute.xlu1 %323  ;;  %v321_v12 = vpop.permute.xlu0 %320 }
  0xb1   : > { %vm392_vm15 = vcmp.eq.s32.totalorder %v1527_v44, %v324_v11  ;;  %vm391_vm0 = vcmp.eq.s32.totalorder %v1527_v44, %v321_v12 }
  0xb2   : > { %v424_v13 = vsel %vm392_vm15, 1.0, %v1370_v39  ;;  %v423_v14 = vsel %vm391_vm0, 1.0, %v1370_v39  ;;  %1106 = vmatmul.mubr.msk.bf16.gmra.mrb[8].mxu0 %vm498_vm6, %v448_v10 }
  0xb3   : > { %v449_v15 = vpack.c.bf16 %v424_v13, %v423_v14 }
  0xb4   : > { %v330_v16 = vpop.permute.xlu1 %329  ;;  %v327_v17 = vpop.permute.xlu0 %326 }
  0xb5   : > { %vm394_vm1 = vcmp.eq.s32.totalorder %v1527_v44, %v330_v16  ;;  %vm393_vm2 = vcmp.eq.s32.totalorder %v1527_v44, %v327_v17  ;;  %1109 = vmatprep.mubr.msk.bf16.mxu0 %vm498_vm6, %v449_v15 }
  0xb6   : > { %v426_v18 = vsel %vm394_vm1, 1.0, %v1370_v39  ;;  %v425_v19 = vsel %vm393_vm2, 1.0, %v1370_v39 }
  0xb7   : > { %v450_v20 = vpack.c.bf16 %v426_v18, %v425_v19 }
  0xb8   : > { %v336_v21 = vpop.permute.xlu1 %335  ;;  %v333_v22 = vpop.permute.xlu0 %332 }
  0xb9   : > { %vm396_vm3 = vcmp.eq.s32.totalorder %v1527_v44, %v336_v21  ;;  %vm395_vm4 = vcmp.eq.s32.totalorder %v1527_v44, %v333_v22 }
  0xba   : > { %v428_v23 = vsel %vm396_vm3, 1.0, %v1370_v39  ;;  %v427_v24 = vsel %vm395_vm4, 1.0, %v1370_v39  ;;  %1110 = vmatmul.mubr.msk.bf16.gmra.mrb[12].mxu0 %vm498_vm6, %v450_v20  ;;  %vm746_vm4 = vcmask 130048  }
  0xbb   : > { %v451_v25 = vpack.c.bf16 %v428_v23, %v427_v24 }
  0xbc   : > { %v342_v26 = vpop.permute.xlu1 %341  ;;  %v339_v27 = vpop.permute.xlu0 %338 }
  0xbd   : > { %vm398_vm5 = vcmp.eq.s32.totalorder %v1527_v44, %v342_v26  ;;  %vm397_vm7 = vcmp.eq.s32.totalorder %v1527_v44, %v339_v27  ;;  %1113 = vmatprep.mubr.msk.bf16.mxu0 %vm498_vm6, %v451_v25 }
  0xbe   : > { %v430_v28 = vsel %vm398_vm5, 1.0, %v1370_v39  ;;  %v429_v29 = vsel %vm397_vm7, 1.0, %v1370_v39  ;;  %vm805_vm5 = vcmask 261120   ;;  %vm808_vm7 = vcmask 392192  }
  0xbf   : > { %v452_v30 = vpack.c.bf16 %v430_v28, %v429_v29 }
  0xc0   : > { %v348_v31 = vpop.permute.xlu1 %347  ;;  %v345_v32 = vpop.permute.xlu0 %344 }
  0xc1   : > { %vm400_vm8 = vcmp.eq.s32.totalorder %v1527_v44, %v348_v31  ;;  %vm399_vm9 = vcmp.eq.s32.totalorder %v1527_v44, %v345_v32 }
  0xc2   : > { %v432_v33 = vsel %vm400_vm8, 1.0, %v1370_v39  ;;  %v431_v34 = vsel %vm399_vm9, 1.0, %v1370_v39  ;;  %1114 = vmatmul.mubr.msk.bf16.gmra.mrb[16].mxu0 %vm498_vm6, %v452_v30  ;;  %vm813_vm8 = vcmask 654336   ;;  %vm816_vm9 = vcmask 785408   ;;  %v756_v30 = vld [vmem:[%s1802_s4 + $0x8] sm:$0xff] }
  0xc3   : > { %v453_v35 = vpack.c.bf16 %v432_v33, %v431_v34  ;;  %v747_v33 = vsel %vm746_vm4, %v1514_v40, 0.0  ;;  %v750_v34 = vsel %vm746_vm4, %v1517_v41, 0.0 }
  0xc4   : > { %v354_v36 = vpop.permute.xlu1 %353  ;;  %v351_v37 = vpop.permute.xlu0 %350  ;;  %748 = vadd.xlane.f32.xlu0 %v747_v33  ;;  %751 = vadd.xlane.f32.xlu1 %v750_v34 }
  0xc5   : > { %vm402_vm10 = vcmp.eq.s32.totalorder %v1527_v44, %v354_v36  ;;  %vm401_vm11 = vcmp.eq.s32.totalorder %v1527_v44, %v351_v37  ;;  %1117 = vmatprep.mubr.msk.bf16.mxu0 %vm498_vm6, %v453_v35  ;;  %v1630_v35 = vld [vmem:[%s1801_s3] ss:$0 sm:$0xff] }
  0xc6   : > { %v434_v38 = vsel %vm402_vm10, 1.0, %v1370_v39  ;;  %v433_v42 = vsel %vm401_vm11, 1.0, %v1370_v39  ;;  %vm819_vm10 = vcmask 916480  }
  0xc7   : > { %v454_v43 = vpack.c.bf16 %v434_v38, %v433_v42 }
  0xc8   : > { %v360_v45 = vpop.permute.xlu1 %359  ;;  %v357_v46 = vpop.permute.xlu0 %356 }
  0xc9   : > { %vm404_vm12 = vcmp.eq.s32.totalorder %v1527_v44, %v360_v45  ;;  %vm403_vm13 = vcmp.eq.s32.totalorder %v1527_v44, %v357_v46 }
  0xca   : > { %v436_v47 = vsel %vm404_vm12, 1.0, %v1370_v39  ;;  %v435_v48 = vsel %vm403_vm13, 1.0, %v1370_v39  ;;  %1118 = vmatmul.mubr.msk.bf16.gmra.mrb[20].mxu0 %vm498_vm6, %v454_v43 }
  0xcb   : > { %v455_v49 = vpack.c.bf16 %v436_v47, %v435_v48 }
  0xcc   : > { %v366_v50 = vpop.permute.xlu1 %365  ;;  %v363_v51 = vpop.permute.xlu0 %362 }
  0xcd   : > { %vm406_vm14 = vcmp.eq.s32.totalorder %v1527_v44, %v366_v50  ;;  %vm405_vm15 = vcmp.eq.s32.totalorder %v1527_v44, %v363_v51  ;;  %1121 = vmatprep.mubr.msk.bf16.mxu0 %vm498_vm6, %v455_v49 }
  0xce   : > { %v438_v52 = vsel %vm406_vm14, 1.0, %v1370_v39  ;;  %v437_v53 = vsel %vm405_vm15, 1.0, %v1370_v39 }
  0xcf   : > { %v456_v54 = vpack.c.bf16 %v438_v52, %v437_v53 }
  0xd0   : > { %v372_v55 = vpop.permute.xlu1 %371  ;;  %v369_v56 = vpop.permute.xlu0 %368 }
  0xd1   : > { %vm408_vm0 = vcmp.eq.s32.totalorder %v1527_v44, %v372_v55  ;;  %vm407_vm1 = vcmp.eq.s32.totalorder %v1527_v44, %v369_v56 }
  0xd2   : > { %v440_v57 = vsel %vm408_vm0, 1.0, %v1370_v39  ;;  %v439_v58 = vsel %vm407_vm1, 1.0, %v1370_v39  ;;  %1122 = vmatmul.mubr.msk.bf16.gmra.mrb[24].mxu0 %vm498_vm6, %v456_v54 }
  0xd3   : > { %v457_v59 = vpack.c.bf16 %v440_v57, %v439_v58 }
  0xd4   : > { %v378_v60 = vpop.permute.xlu1 %377  ;;  %v375_v61 = vpop.permute.xlu0 %374 }
  0xd5   : > { %vm410_vm2 = vcmp.eq.s32.totalorder %v1527_v44, %v378_v60  ;;  %vm409_vm3 = vcmp.eq.s32.totalorder %v1527_v44, %v375_v61  ;;  %1125 = vmatprep.mubr.msk.bf16.mxu0 %vm498_vm6, %v457_v59 }
  0xd6   : > { %v442_v62 = vsel %vm410_vm2, 1.0, %v1370_v39  ;;  %v441_v63 = vsel %vm409_vm3, 1.0, %v1370_v39 }
  0xd7   : > { %v458_v0 = vpack.c.bf16 %v442_v62, %v441_v63 }
  0xd8   : > { %v1215_v1 = vpop.permute.xlu0 %1214  ;;  %v1220_v2 = vpop.permute.xlu1 %1219 }
  0xd9   : > { %v1217_v3 = vunpack.i.h.bf16 %v1215_v1  ;;  %v1216_v4 = vunpack.i.l.bf16 %v1215_v1  ;;  %v1222_v5 = vunpack.i.h.bf16 %v1220_v2  ;;  %v1221_v6 = vunpack.i.l.bf16 %v1220_v2 }
  0xda   : > { %1126 = vmatmul.mubr.msk.bf16.gmra.mrb[28].mxu0 %vm498_vm6, %v458_v0 }
  0xdb   : > { %v804_v44 = vsel %vm746_vm4, %v1517_v41, %v1217_v3  ;;  %v803_v8 = vsel %vm746_vm4, %v1514_v40, %v1216_v4 }
  0xdc   : > { %v1225_v7 = vpop.permute.xlu0 %1224  ;;  %v1230_v9 = vpop.permute.xlu1 %1229  ;;  %v806_v39 = vsel %vm805_vm5, %v803_v8, %v1221_v6  ;;  %v807_v10 = vsel %vm805_vm5, %v804_v44, %v1222_v5 }
  0xdd   : > { %v1226_v11 = vunpack.i.l.bf16 %v1225_v7  ;;  %v1231_v12 = vunpack.i.l.bf16 %v1230_v9  ;;  %v1227_v13 = vunpack.i.h.bf16 %v1225_v7  ;;  %v1232_v15 = vunpack.i.h.bf16 %v1230_v9 }
  0xdf   : > { %v809_v16 = vsel %vm808_vm7, %v806_v39, %v1226_v11  ;;  %v810_v21 = vsel %vm808_vm7, %v807_v10, %v1227_v13 }
  0xe0   : > { %v786_v14 = vpop.permute.xlu0 %785  ;;  %v792_v17 = vpop.permute.xlu1 %791  ;;  %v811_v18 = vsel %vm498_vm6, %v809_v16, %v1231_v12  ;;  %v812_v23 = vsel %vm498_vm6, %v810_v21, %v1232_v15 }
  0xe1   : > { %v814_v19 = vsel %vm813_vm8, %v811_v18, %v786_v14 }
  0xe2   : > { %v817_v25 = vsel %vm816_vm9, %v814_v19, %v792_v17 }
  0xe4   : > { %v798_v20 = vpop.permute.xlu0 %797  ;;  %v788_v22 = vpop.permute.xlu1 %787 }
  0xe5   : > { %v815_v24 = vsel %vm813_vm8, %v812_v23, %v788_v22  ;;  %v1620_v31 = vsel %vm819_vm10, %v817_v25, %v798_v20 }
  0xe6   : > { %v823_v32 = vmul.f32 %v1620_v31, %v756_v30 }
  0xe8   : > { %v794_v26 = vpop.permute.xlu0 %793  ;;  %v800_v28 = vpop.permute.xlu1 %799  ;;  %890 = vmatprep.mubr.f32.mxu1 %v823_v32 }
  0xe9   : > { %v818_v27 = vsel %vm816_vm9, %v815_v24, %v794_v26 }
  0xea   : > { %v1615_v29 = vsel %vm819_vm10, %v818_v27, %v800_v28 }
 0x175   : > { %v1099_v36 = vpop.f32.mrb[0].mxu0 }
 0x176   : > { %v590_v37 = vadd.f32 %v1099_v36, %v1630_v35  ;;  %v581_v38 = vpop.f32.mrb[1].mxu0 }
 0x177   : > { %v582_v42 = vadd.f32 %v1630_v35, %v581_v38  ;;  %v1100_v43 = vpop.f32.mrb[2].mxu0 }
 0x178   : > { %1237 = vtanh.f32 %v590_v37  ;;  %v593_v40 = vadd.f32 %v1100_v43, %v1630_v35  ;;  %v584_v45 = vpop.f32.mrb[3].mxu0 }
 0x179   : > { %1239 = vtanh.f32 %v582_v42  ;;  %v585_v41 = vadd.f32 %v1630_v35, %v584_v45 }
 0x17a   : > { %1241 = vtanh.f32 %v593_v40 }
 0x17b   : > { %1243 = vtanh.f32 %v585_v41 }
 0x17d   : > { %v1103_v46 = vpop.f32.mrb[4].mxu0 }
 0x17e   : > { %v606_v47 = vadd.f32 %v1103_v46, %v1630_v35  ;;  %v597_v48 = vpop.f32.mrb[5].mxu0 }
 0x17f   : > { %v598_v49 = vadd.f32 %v1630_v35, %v597_v48  ;;  %v1104_v50 = vpop.f32.mrb[6].mxu0 }
 0x180   : > { %1245 = vtanh.f32 %v606_v47  ;;  %v609_v51 = vadd.f32 %v1104_v50, %v1630_v35  ;;  %v600_v52 = vpop.f32.mrb[7].mxu0 }
 0x181   : > { %1247 = vtanh.f32 %v598_v49  ;;  %v601_v53 = vadd.f32 %v1630_v35, %v600_v52 }
 0x182   : > { %v1640_v54 = vpop.eup %1237  ;;  %1249 = vtanh.f32 %v609_v51 }
 0x183   : > { %v1642_v55 = vpop.eup %1239  ;;  %1251 = vtanh.f32 %v601_v53 }
 0x184   : > { %v1644_v56 = vpop.eup %1241 }
 0x185   : > { %v1646_v57 = vpop.eup %1243  ;;  %v1107_v58 = vpop.f32.mrb[8].mxu0  ;;  %v1135_v59 = vpack.c.bf16 %v1644_v56, %v1640_v54 }
 0x186   : > { %v622_v60 = vadd.f32 %v1107_v58, %v1630_v35  ;;  %v613_v61 = vpop.f32.mrb[9].mxu0  ;;  %v1131_v62 = vpack.c.bf16 %v1646_v57, %v1642_v55 }
 0x187   : > { %v614_v63 = vadd.f32 %v1630_v35, %v613_v61  ;;  %v1108_v0 = vpop.f32.mrb[10].mxu0 }
 0x188   : > { %1253 = vtanh.f32 %v622_v60  ;;  %v625_v1 = vadd.f32 %v1108_v0, %v1630_v35  ;;  %v616_v2 = vpop.f32.mrb[11].mxu0 }
 0x189   : > { %1255 = vtanh.f32 %v614_v63  ;;  %v617_v3 = vadd.f32 %v1630_v35, %v616_v2 }
 0x18a   : > { %v1656_v4 = vpop.eup %1245  ;;  %1257 = vtanh.f32 %v625_v1 }
 0x18b   : > { %v1658_v5 = vpop.eup %1247  ;;  %1259 = vtanh.f32 %v617_v3 }
 0x18c   : > { %v1660_v6 = vpop.eup %1249 }
 0x18d   : > { %v1662_v7 = vpop.eup %1251  ;;  %v1111_v44 = vpop.f32.mrb[12].mxu0  ;;  %v1143_v8 = vpack.c.bf16 %v1660_v6, %v1656_v4  ;;  %v755_v4 = vld [vmem:[%s1802_s4] sm:$0xff]  ;;  %v758_v6 = vld [vmem:[%s1802_s4 + $0x18] sm:$0xff] }
 0x18e   : > { %v638_v9 = vadd.f32 %v1111_v44, %v1630_v35  ;;  %v629_v39 = vpop.f32.mrb[13].mxu0  ;;  %v1139_v10 = vpack.c.bf16 %v1662_v7, %v1658_v5 }
 0x18f   : > { %v630_v11 = vadd.f32 %v1630_v35, %v629_v39  ;;  %v1112_v12 = vpop.f32.mrb[14].mxu0 }
 0x190   : > { %1261 = vtanh.f32 %v638_v9  ;;  %v641_v13 = vadd.f32 %v1112_v12, %v1630_v35  ;;  %v632_v14 = vpop.f32.mrb[15].mxu0 }
 0x191   : > { %1263 = vtanh.f32 %v630_v11  ;;  %v633_v15 = vadd.f32 %v1630_v35, %v632_v14 }
 0x192   : > { %v1672_v16 = vpop.eup %1253  ;;  %1265 = vtanh.f32 %v641_v13 }
 0x193   : > { %v1674_v17 = vpop.eup %1255  ;;  %1267 = vtanh.f32 %v633_v15 }
 0x194   : > { %v1676_v18 = vpop.eup %1257 }
 0x195   : > { %v1678_v19 = vpop.eup %1259  ;;  %v1115_v20 = vpop.f32.mrb[16].mxu0  ;;  %v1151_v21 = vpack.c.bf16 %v1676_v18, %v1672_v16  ;;  %v757_v16 = vld [vmem:[%s1802_s4 + $0x10] sm:$0xff] }
 0x196   : > { %v654_v22 = vadd.f32 %v1115_v20, %v1630_v35  ;;  %v645_v23 = vpop.f32.mrb[17].mxu0  ;;  %v1147_v24 = vpack.c.bf16 %v1678_v19, %v1674_v17  ;;  %v825_v17 = vmul.f32 %v1615_v29, %v758_v6  ;;  %v824_v18 = vmul.f32 %v1615_v29, %v757_v16  ;;  %v749_v19 = vpop.xlane.xlu0 %748 }
 0x197   : > { %v646_v25 = vadd.f32 %v1630_v35, %v645_v23  ;;  %v1116_v26 = vpop.f32.mrb[18].mxu0 }
 0x198   : > { %1269 = vtanh.f32 %v654_v22  ;;  %v657_v27 = vadd.f32 %v1116_v26, %v1630_v35  ;;  %v648_v28 = vpop.f32.mrb[19].mxu0 }
 0x199   : > { %1271 = vtanh.f32 %v646_v25  ;;  %v649_v30 = vadd.f32 %v1630_v35, %v648_v28 }
 0x19a   : > { %v1688_v32 = vpop.eup %1261  ;;  %1273 = vtanh.f32 %v657_v27 }
 0x19b   : > { %v1690_v33 = vpop.eup %1263  ;;  %1275 = vtanh.f32 %v649_v30 }
 0x19c   : > { %v1692_v34 = vpop.eup %1265 }
 0x19d   : > { %v1694_v36 = vpop.eup %1267  ;;  %v1119_v37 = vpop.f32.mrb[20].mxu0  ;;  %v1159_v38 = vpack.c.bf16 %v1692_v34, %v1688_v32 }
 0x19e   : > { %v670_v42 = vadd.f32 %v1119_v37, %v1630_v35  ;;  %v661_v43 = vpop.f32.mrb[21].mxu0  ;;  %v1155_v40 = vpack.c.bf16 %v1694_v36, %v1690_v33 }
 0x19f   : > { %v662_v45 = vadd.f32 %v1630_v35, %v661_v43  ;;  %v1120_v41 = vpop.f32.mrb[22].mxu0 }
 0x1a0   : > { %1277 = vtanh.f32 %v670_v42  ;;  %v673_v46 = vadd.f32 %v1120_v41, %v1630_v35  ;;  %v664_v47 = vpop.f32.mrb[23].mxu0 }
 0x1a1   : > { %1279 = vtanh.f32 %v662_v45  ;;  %v665_v48 = vadd.f32 %v1630_v35, %v664_v47 }
 0x1a2   : > { %v1270_v49 = vpop.eup %1269  ;;  %1281 = vtanh.f32 %v673_v46 }
 0x1a3   : > { %v1272_v50 = vpop.eup %1271  ;;  %1283 = vtanh.f32 %v665_v48 }
 0x1a4   : > { %v1274_v51 = vpop.eup %1273 }
 0x1a5   : > { %v1276_v52 = vpop.eup %1275  ;;  %v1123_v53 = vpop.f32.mrb[24].mxu0  ;;  %v1133_v58 = vpack.c.bf16 %v1274_v51, %v1270_v49 }
 0x1a6   : > { %v686_v60 = vadd.f32 %v1123_v53, %v1630_v35  ;;  %v677_v61 = vpop.f32.mrb[25].mxu0  ;;  %v1129_v63 = vpack.c.bf16 %v1276_v52, %v1272_v50 }
 0x1a7   : > { %v678_v0 = vadd.f32 %v1630_v35, %v677_v61  ;;  %v1124_v1 = vpop.f32.mrb[26].mxu0 }
 0x1a8   : > { %1285 = vtanh.f32 %v686_v60  ;;  %v689_v2 = vadd.f32 %v1124_v1, %v1630_v35  ;;  %v680_v3 = vpop.f32.mrb[27].mxu0  ;;  %1130 = vmatprep.subr.bf16.mxu1 %v1129_v63 }
 0x1a9   : > { %1287 = vtanh.f32 %v678_v0  ;;  %v681_v44 = vadd.f32 %v1630_v35, %v680_v3  ;;  %1132 = vmatpush3.bf16.msra.mxu1 %v1131_v62 }
 0x1aa   : > { %v1278_v9 = vpop.eup %1277  ;;  %1289 = vtanh.f32 %v689_v2  ;;  %1134 = vmatprep.subr.bf16.mxu1 %v1133_v58 }
 0x1ab   : > { %v1280_v39 = vpop.eup %1279  ;;  %1291 = vtanh.f32 %v681_v44 }
 0x1ac   : > { %v1282_v11 = vpop.eup %1281 }
 0x1ad   : > { %v1284_v12 = vpop.eup %1283  ;;  %v1127_v13 = vpop.f32.mrb[28].mxu0  ;;  %1136 = vmatpush3.bf16.msra.mxu1 %v1135_v59  ;;  %v1141_v14 = vpack.c.bf16 %v1282_v11, %v1278_v9 }
 0x1ae   : > { %v702_v15 = vadd.f32 %v1127_v13, %v1630_v35  ;;  %v693_v20 = vpop.f32.mrb[29].mxu0  ;;  %v1137_v22 = vpack.c.bf16 %v1284_v12, %v1280_v39 }
 0x1af   : > { %v694_v55 = vadd.f32 %v1630_v35, %v693_v20  ;;  %v1128_v57 = vpop.f32.mrb[30].mxu0 }
 0x1b0   : > { %1293 = vtanh.f32 %v702_v15  ;;  %v705_v62 = vadd.f32 %v1128_v57, %v1630_v35  ;;  %v696_v23 = vpop.f32.mrb[31].mxu0  ;;  %1138 = vmatprep.subr.bf16.mxu1 %v1137_v22 }
 0x1b1   : > { %1295 = vtanh.f32 %v694_v55  ;;  %v697_v25 = vadd.f32 %v1630_v35, %v696_v23  ;;  %1140 = vmatpush3.bf16.msra.mxu1 %v1139_v10 }
 0x1b2   : > { %v1286_v54 = vpop.eup %1285  ;;  %1297 = vtanh.f32 %v705_v62  ;;  %1142 = vmatprep.subr.bf16.mxu1 %v1141_v14 }
 0x1b3   : > { %v1288_v56 = vpop.eup %1287  ;;  %1299 = vtanh.f32 %v697_v25 }
 0x1b4   : > { %v1290_v59 = vpop.eup %1289 }
 0x1b5   : > { %v1292_v26 = vpop.eup %1291  ;;  %1144 = vmatpush3.bf16.msra.mxu1 %v1143_v8  ;;  %v1149_v27 = vpack.c.bf16 %v1290_v59, %v1286_v54  ;;  %v822_v8 = vmul.f32 %v1620_v31, %v755_v4 }
 0x1b6   : > { %v1145_v28 = vpack.c.bf16 %v1292_v26, %v1288_v56 }
 0x1b8   : > { %1146 = vmatprep.subr.bf16.mxu1 %v1145_v28 }
 0x1b9   : > { %1148 = vmatpush3.bf16.msra.mxu1 %v1147_v24  ;;  %v752_v24 = vpop.xlane.xlu1 %751 }
 0x1ba   : > { %v1294_v35 = vpop.eup %1293  ;;  %1150 = vmatprep.subr.bf16.mxu1 %v1149_v27  ;;  %v754_v32 = vmax.f32 %v752_v24, 1.0 }
 0x1bb   : > { %v1296_v5 = vpop.eup %1295 }
 0x1bc   : > { %v1298_v7 = vpop.eup %1297 }
 0x1bd   : > { %v1300_v10 = vpop.eup %1299  ;;  %1152 = vmatpush3.bf16.msra.mxu1 %v1151_v21  ;;  %v1157_v30 = vpack.c.bf16 %v1298_v7, %v1294_v35  ;;  %v753_v21 = vmax.f32 %v749_v19, 1.0 }
 0x1be   : > { %v1153_v37 = vpack.c.bf16 %v1300_v10, %v1296_v5 }
 0x1bf   : > { %1301 = vrcp.f32 %v753_v21 }
 0x1c0   : > { %1154 = vmatprep.subr.bf16.mxu1 %v1153_v37  ;;  %1303 = vrcp.f32 %v754_v32 }
 0x1c1   : > { %1156 = vmatpush3.bf16.msra.mxu1 %v1155_v40 }
 0x1c2   : > { %1158 = vmatprep.subr.bf16.mxu1 %v1157_v30 }
 0x1c5   : > { %1160 = vmatpush3.bf16.msra.mxu1 %v1159_v38 }
 0x1c8   : > { %891 = vmatmul.mubr.f32.vlgmr.msra.gmra.mrb[0].mxu1 %v822_v8 }
 0x1c9   : > { %895 = vmatprep.mubr.f32.mxu1 %v825_v17  ;;  %v1302_v33 = vpop.eup %1301 }
 0x1ca   : > { %v1304_v29 = vpop.eup %1303 }
 0x1cc   : > { %896 = vmatmul.mubr.f32.gmra.mrb[2].mxu1 %v824_v18 }
 0x29b   : > { %v1083_v31 = vpop.f32.mrb[0].mxu1 }
 0x29c   : > { %v1084_v34 = vpop.f32.mrb[1].mxu1 }
 0x29d   : > { %v1085_v36 = vadd.f32 %v1084_v34, %v1083_v31 }
 0x29f   : > { %v903_v38 = vmul.f32 %v1302_v33, %v1085_v36  ;;  %v1086_v42 = vpop.f32.mrb[2].mxu1 }
 0x2a0   : > { %v1087_v43 = vpop.f32.mrb[3].mxu1 }
 0x2a1   : > { %905 = vst [vmem:[%s234_s10] sm:$0xff] %v903_v38  ;;  %v1088_v40 = vadd.f32 %v1087_v43, %v1086_v42 }
 0x2a3   : > { %v904_v45 = vmul.f32 %v1304_v29, %v1088_v40 }
 0x2a5   : > { %906 = vst [vmem:[%s234_s10 + $0x8] sm:$0xff] %v904_v45 }
 0x2a6   : > { %1318 = shalt.err (!%p1315_p4)
}
 0x2a7   : > { %s1319_s26 = scalar_lea.hbm %s1755_s15, 256  ;;  %s1323_s7 = scalar_lea.hbm %s1803_s5, 1024 }
 0x2a8   : > { %p1320_p7 = scmp.ne.s32.totalorder %s1755_s15, %s1319_s26  ;;  %p1324_p10 = scmp.lt.u32.totalorder %s1755_s15, %s1803_s5 }
 0x2a9   : > { %p1325_p11 = scmp.lt.u32.totalorder %s1323_s7, %s1319_s26  ;;  %p1327_p13 = scmp.lt.u32.totalorder %s1319_s26, %s1755_s15 }
 0x2aa   : > { %p1321_p8 = pnand %p1320_p7, %p1449_p5 }
 0x2ab   : > { %p1326_p12 = por %p1325_p11, %p1324_p10 }
 0x2ac   : > { %p1322_p9 = pneg %p1321_p8 }
 0x2ad   : > { %p1328_p0 = por %p1327_p13, %p1326_p12 }
 0x2af   : > { %p1329_p1 = pnand %p1328_p0, %p1322_p9 }
 0x2b1   : > { %1332 = shalt.err (!%p1329_p1)
}
 0x2b2   : > { %s1379_s10 = smov 128   ;;  %s1380_s12 = smov 8  }
 0x2b3   : > { %1161 = dma.vmem_to_hbm [thread:$0]  (%p1449_p5), %s1750_s11, 256, %s1755_s15, %s1757_s16, %s1379_s10, %s1379_s10, %s1380_s12  }
 0x2b4 PF: > { %p1167_p2 = scmp.ge.s32.totalorder %s1367_s21, 2  ;;  %s936_s13 = sand.u32 1, %s1355_s18  }
 0x2b5   : > { %s937_s14 = scalar_lea.sflag [#allocation3], %s936_s13 }
 0x2b6   : > { %p1164_p3 = pnand %p1167_p2, %p1453_p6 }
 0x2b8   : > { %1350 = dma.done.wait (!%p1164_p3), %s937_s14, 256  }
 0x2b9   : > { %1352 = vsyncadd (!%p1164_p3), %s937_s14, 4294967040  ;;  %p15_p4 = scmp.ge.s32.totalorder %s1436_s24, 6   ;;  %s1806_s18 = smov %s1359_s19 }
 0x2ba   : > { %s1807_s19 = smov %s1363_s20  ;;  %s1808_s20 = smov %s1447_s27 }
 0x2bb   : > { %s1809_s21 = smov %s1436_s24  ;;  %17 = sbr.rel (!%p15_p4) target bundleno = 3 (0x3), region = 78 }
 0x2c2   :  { %942 = vsyncpa [#allocation3], 1 }
 0x2c3   :  { %944 = vsyncpa [#allocation3 + $0x1], 1 }

</bundles_post_ra>
